<compile_context>
chip_gen: v7x
topology: tpu7x:2x2x1
jax: 0.10.0
libtpu: 0.0.40
codegen_flags: <defaults>
</compile_context>

<pallas_src>
import jax
import jax.numpy as jnp
from jax.experimental import pallas as pl
from jax.experimental.pallas import tpu as pltpu


# --------------------------------------------------------------------------
# Pallas kernel: TextCNN (Conv1d k=3 pad=1 + ReLU + max over seq) + fused head
# Grid: (batch_tiles, seq_chunks); seq axis is a reduction carried in scratch.
# --------------------------------------------------------------------------
def _head_kernel(x_ref, pooled_ref,
                 wcat_ref, bconv_ref, wpool_ref, wfeat_ref, bhead_ref,
                 out_ref,
                 acc_ref, cp0_ref, ch_ref):
    tb, Sc, H = x_ref.shape
    c = pl.program_id(1)
    nc = pl.num_programs(1)

    # -- init running max + carries at the first sequence chunk -------------
    @pl.when(c == 0)
    def _():
        acc_ref[...] = jnp.full_like(acc_ref, -jnp.inf)   # running max of h rows
        cp0_ref[...] = jnp.zeros_like(cp0_ref)            # p0 of row (s0 - 1)

    # -- all three conv taps in ONE MXU pass over this chunk ----------------
    #   p0[u] = x[u] @ W0^T  -> contributes to h[u+1]
    #   p1[u] = x[u] @ W1^T  -> contributes to h[u]
    #   p2[u] = x[u] @ W2^T  -> contributes to h[u-1]
    x2 = x_ref[...].reshape(tb * Sc, H)                    # bf16
    pcat = jnp.dot(x2, wcat_ref[...],
                   preferred_element_type=jnp.float32).reshape(tb, Sc, 3 * H)
    p0 = pcat[:, :, 0 * H:1 * H]
    p1 = pcat[:, :, 1 * H:2 * H]
    p2 = pcat[:, :, 2 * H:3 * H]

    # -- complete the pending row (last row of the previous chunk) ----------
    @pl.when(c > 0)
    def _():
        acc_ref[...] = jnp.maximum(acc_ref[...], ch_ref[...] + p2[:, 0, :])

    seq_idx = jax.lax.broadcasted_iota(jnp.int32, (1, Sc, 1), 1)
    first_row = seq_idx == 0
    last_row = seq_idx == Sc - 1

    # q[j] = p1[j] + p0[j-1]; row 0 takes the carried p0 (zero at global row 0)
    q = p1 + jnp.where(first_row, cp0_ref[...][:, None, :],
                       pltpu.roll(p0, shift=1, axis=1))

    # h[j] = q[j] + p2[j+1] : complete for rows 0..Sc-2; last row stays pending
    h = q + jnp.where(last_row, 0.0, pltpu.roll(p2, shift=Sc - 1, axis=1))
    acc_ref[...] = jnp.maximum(
        acc_ref[...], jnp.max(jnp.where(last_row, -jnp.inf, h), axis=1))

    # carries for the next chunk
    cp0_ref[...] = p0[:, Sc - 1, :]
    ch_ref[...] = q[:, Sc - 1, :]

    # -- final chunk: last row has no right-tap term; then the fused head ---
    @pl.when(c == nc - 1)
    def _():
        # bias + ReLU commute with the sequence max (monotone, pos-invariant)
        feats = jnp.maximum(
            jnp.maximum(acc_ref[...], ch_ref[...]) + bconv_ref[...], 0.0)
        pooled = pooled_ref[...].reshape(tb, H)
        logits = (jnp.dot(pooled, wpool_ref[...],
                          preferred_element_type=jnp.float32)
                  + jnp.dot(feats, wfeat_ref[...],
                            preferred_element_type=jnp.float32)
                  + bhead_ref[...])
        out_ref[...] = logits[:, None, :].astype(out_ref.dtype)


# --------------------------------------------------------------------------
# VMEM sizing / tile selection (generation aware)
# --------------------------------------------------------------------------
def _vmem_budget_bytes():
    try:
        info = pltpu.get_tpu_info()
        cap = getattr(info, "vmem_capacity_bytes", None) or (64 << 20)
    except Exception:
        cap = 64 << 20                       # conservative default (v7x-sized)
    # never request the full physical VMEM; leave headroom for Mosaic scratch
    return max(int(cap * 0.6), 24 << 20)


def _vmem_estimate_bytes(tb, sc, H, C):
    x_blk = tb * sc * H * 2                  # bf16 activation chunk
    slab = tb * sc * H * 4                   # one f32 chunk-sized temp
    weights = 3 * H * H * 2 + 2 * H * C * 4 + (H + 2 * C) * 4
    return int(2 * x_blk                     # double-buffered input chunk
               + 8 * slab                    # conv temps (pcat/taps/rolls/q/h)
               + 2 * weights                 # constant weights (2 pipeline bufs)
               + 2 * tb * H * 4              # pooled block
               + 3 * tb * H * 4              # scratch (acc + 2 carries)
               + 2 * tb * C * 4              # output block
               + (2 << 20))                  # fixed slack


def _pick_tiles(B, S, H, C, budget):
    tb_cands = [t for t in (64, 32, 16, 8, 4, 2, 1) if t <= B and B % t == 0]
    sc_cands = [s for s in (128, 64, 32, 16, 8) if s < S and S % s == 0]
    if S <= 128 or not sc_cands:
        sc_cands = [S] + sc_cands
    fitting = [(tb, sc) for sc in sc_cands for tb in tb_cands
               if _vmem_estimate_bytes(tb, sc, H, C) <= budget]
    if not fitting:                          # nothing fits: take the smallest tile
        fitting = [(min(tb_cands), min(sc_cands))]

    def _key(cfg):
        tb, sc = cfg
        bsteps = B // tb
        steps = bsteps * (S // sc)
        return (bsteps >= 2,                 # v7x: feed both TensorCores
                steps >= 4,                  # let DMA pipelining overlap compute
                tb * sc,                     # then prefer the biggest tile
                tb)
    return max(fitting, key=_key)


# --------------------------------------------------------------------------
# One-time repack of the PyTorch-layout weights (jit-constant)
# --------------------------------------------------------------------------
def prepare_head_params(params):
    conv_w = params['conv_w']                                 # (H, H, 3) torch layout
    H = conv_w.shape[0]
    # single (H, 3H) bf16 conv weight: columns [kH:(k+1)H) = tap k
    w_cat = jnp.concatenate([conv_w[:, :, k].T for k in range(3)],
                            axis=1).astype(jnp.bfloat16)      # (H, 3H)
    b_conv = params['conv_b'].reshape(1, H).astype(jnp.float32)

    w_fc = params['fc_w'].T.astype(jnp.float32)               # (H, C)
    b_fc = params['fc_b'].reshape(1, -1).astype(jnp.float32)  # (1, C)
    w_cls = params['cls_w']                                   # (C, H + C)
    b_cls = params['cls_b'].reshape(1, -1).astype(jnp.float32)
    w_cls_pooled = w_cls[:, :H].T.astype(jnp.float32)         # (H, C)
    w_cls_cnn = w_cls[:, H:].T.astype(jnp.float32)            # (C, C)

    # Fold the TextCNN fc into the classifier (exact in eval mode; dropout=id):
    #   logits = pooled @ Wp + (feats @ Wfc + bfc) @ Wc + bcls
    w_feats = (w_fc @ w_cls_cnn).astype(jnp.float32)          # (H, C)
    b_head = (b_fc @ w_cls_cnn + b_cls).astype(jnp.float32)   # (1, C)

    return {'w_cat': w_cat, 'b_conv': b_conv,
            'w_pooled': w_cls_pooled, 'w_feats': w_feats, 'b_head': b_head}


# --------------------------------------------------------------------------
# Wrapper: pallas_call with a (batch, seq-chunk) grid
# --------------------------------------------------------------------------
def textcnn_classifier_head(hidden_states, pooled_output, head_params,
                            *, batch_tile=None, seq_chunk=None):
    B, S, H = hidden_states.shape
    C = head_params['b_head'].shape[-1]

    budget = _vmem_budget_bytes()
    tb_auto, sc_auto = _pick_tiles(B, S, H, C, budget)
    tb = int(batch_tile) if batch_tile else tb_auto
    Sc = int(seq_chunk) if seq_chunk else sc_auto
    if B % tb != 0 or S % Sc != 0 or Sc < 2:
        raise ValueError(f"invalid tiles tb={tb}, Sc={Sc} for B={B}, S={S}")

    grid = (B // tb, S // Sc)
    x = hidden_states.astype(jnp.bfloat16)
    pooled = pooled_output.astype(jnp.float32).reshape(B, 1, H)
    vmem_limit = int(budget)

    out = pl.pallas_call(
        _head_kernel,
        out_shape=jax.ShapeDtypeStruct((B, 1, C), jnp.float32),
        grid=grid,
        in_specs=[
            pl.BlockSpec((tb, Sc, H), lambda b, c: (b, c, 0)),   # activation chunk
            pl.BlockSpec((tb, 1, H), lambda b, c: (b, 0, 0)),    # pooled tile
            pl.BlockSpec((H, 3 * H), lambda b, c: (0, 0)),       # fused conv taps
            pl.BlockSpec((1, H), lambda b, c: (0, 0)),           # conv bias
            pl.BlockSpec((H, C), lambda b, c: (0, 0)),           # classifier (pooled)
            pl.BlockSpec((H, C), lambda b, c: (0, 0)),           # classifier (cnn, fc folded)
            pl.BlockSpec((1, C), lambda b, c: (0, 0)),           # folded bias
        ],
        out_specs=pl.BlockSpec((tb, 1, C), lambda b, c: (b, 0, 0)),
        scratch_shapes=[
            pltpu.VMEM((tb, H), jnp.float32),   # running max over sequence
            pltpu.VMEM((tb, H), jnp.float32),   # carried p0 of previous row
            pltpu.VMEM((tb, H), jnp.float32),   # carried partial h of previous row
        ],
        compiler_params=pltpu.CompilerParams(
            dimension_semantics=("parallel", "arbitrary"),
            vmem_limit_bytes=vmem_limit,
        ),
    )(x, pooled,
      head_params['w_cat'], head_params['b_conv'],
      head_params['w_pooled'], head_params['w_feats'], head_params['b_head'])
    return out.reshape(B, C)


# --------------------------------------------------------------------------
# Glue: synthetic stand-in for the frozen pretrained BERT encoder
# --------------------------------------------------------------------------
def synthetic_bert(input_ids, attention_mask, params):
    # TODO(synk): BertModel.from_pretrained('bert-base-chinese') is a frozen
    # pretrained checkpoint; substituted a deterministic single-layer synthetic
    # encoder producing last_hidden_state (B,S,H) and pooler_output (B,H).
    emb = params['emb'][input_ids]                                  # (B, S, H)
    hidden = jnp.tanh(emb @ params['enc_w'] + params['enc_b'])      # (B, S, H)
    hidden = hidden * attention_mask[..., None].astype(hidden.dtype)
    pooled = jnp.tanh(hidden[:, 0, :] @ params['pool_w'] + params['pool_b'])
    return hidden, pooled


def my_model_forward(input_ids, attention_mask, params, head_params):
    hidden_states, pooled_output = synthetic_bert(input_ids, attention_mask, params)
    return textcnn_classifier_head(hidden_states, pooled_output, head_params)


# --------------------------------------------------------------------------
# Pure-JAX reference of the head (mirrors the PyTorch graph exactly)
# --------------------------------------------------------------------------
def head_reference(hidden_states, pooled_output, params):
    conv_w, conv_b = params['conv_w'], params['conv_b']
    xp = jnp.pad(hidden_states, ((0, 0), (1, 1), (0, 0)))
    h = (jnp.einsum('bsh,oh->bso', xp[:, :-2], conv_w[:, :, 0])
         + jnp.einsum('bsh,oh->bso', xp[:, 1:-1], conv_w[:, :, 1])
         + jnp.einsum('bsh,oh->bso', xp[:, 2:], conv_w[:, :, 2])
         + conv_b)
    h = jnp.maximum(h, 0.0)
    feats = jnp.max(h, axis=1)
    cnn_logits = feats @ params['fc_w'].T + params['fc_b']
    cat = jnp.concatenate([pooled_output, cnn_logits], axis=1)
    return cat @ params['cls_w'].T + params['cls_b']


# --------------------------------------------------------------------------
# Deterministic parameter init (shapes follow the module __init__)
# --------------------------------------------------------------------------
def init_params(key, vocab, hidden, num_labels):
    ks = jax.random.split(key, 9)
    s = 0.02
    H, C = hidden, num_labels
    return {
        # synthetic encoder
        'emb':    jax.random.normal(ks[0], (vocab, H), jnp.float32) * s,
        'enc_w':  jax.random.normal(ks[1], (H, H), jnp.float32) * s,
        'enc_b':  jnp.zeros((H,), jnp.float32),
        'pool_w': jax.random.normal(ks[2], (H, H), jnp.float32) * s,
        'pool_b': jnp.zeros((H,), jnp.float32),
        # TextCNN: Conv1d(H, H, k=3, pad=1) + Linear(H, C)
        'conv_w': jax.random.normal(ks[3], (H, H, 3), jnp.float32) * s,
        'conv_b': jax.random.normal(ks[4], (H,), jnp.float32) * s,
        'fc_w':   jax.random.normal(ks[5], (C, H), jnp.float32) * s,
        'fc_b':   jax.random.normal(ks[6], (C,), jnp.float32) * s,
        # classifier: Linear(H + C, C)   (real model: Linear(770, num_labels))
        'cls_w':  jax.random.normal(ks[7], (C, H + C), jnp.float32) * s,
        'cls_b':  jax.random.normal(ks[8], (C,), jnp.float32) * s,
    }


if __name__ == "__main__":
    B, S, H, C, VOCAB = 4, 16, 128, 2, 100
    key = jax.random.PRNGKey(0)
    pkey, ikey = jax.random.split(key)

    params = init_params(pkey, VOCAB, H, C)
    head_params = prepare_head_params(params)

    input_ids = jax.random.randint(ikey, (B, S), 0, VOCAB, dtype=jnp.int32)
    attention_mask = jnp.ones((B, S), dtype=jnp.int32)

    hidden_states, pooled_output = synthetic_bert(input_ids, attention_mask, params)
    ref = head_reference(hidden_states, pooled_output, params)
    tol = 5e-3 * max(1.0, float(jnp.max(jnp.abs(ref))))   # scale-aware (bf16 path)

    # 1) auto-tiled path (policy picks batch tile + sequence chunk)
    logits = my_model_forward(input_ids, attention_mask, params, head_params)
    jax.block_until_ready(logits)
    assert logits.shape == (B, C) and logits.dtype == jnp.float32
    err = float(jnp.max(jnp.abs(logits - ref)))
    assert err < tol, f"auto-tiled: max abs error {err} (tol {tol})"

    # 2) explicit multi-chunk + multi-batch-tile path (exercises the carries)
    logits2 = textcnn_classifier_head(hidden_states, pooled_output, head_params,
                                      batch_tile=2, seq_chunk=8)
    jax.block_until_ready(logits2)
    err2 = float(jnp.max(jnp.abs(logits2 - ref)))
    assert err2 < tol, f"chunked: max abs error {err2} (tol {tol})"

    # 3) single-step path (whole batch + sequence in one grid step)
    logits3 = textcnn_classifier_head(hidden_states, pooled_output, head_params,
                                      batch_tile=B, seq_chunk=S)
    jax.block_until_ready(logits3)
    err3 = float(jnp.max(jnp.abs(logits3 - ref)))
    assert err3 < tol, f"single-step: max abs error {err3} (tol {tol})"

    print("KERNEL_OK")
</pallas_src>

<mosaic_0001>
module attributes {stable_mosaic.version = 11 : i64} {
  func.func @_head_kernel(%arg0: i32, %arg1: i32, %arg2: memref<2x8x128xbf16, #tpu.memory_space<vmem>>, %arg3: memref<2x1x128xf32, #tpu.memory_space<vmem>>, %arg4: memref<128x384xbf16, #tpu.memory_space<vmem>>, %arg5: memref<1x128xf32, #tpu.memory_space<vmem>>, %arg6: memref<128x2xf32, #tpu.memory_space<vmem>>, %arg7: memref<128x2xf32, #tpu.memory_space<vmem>>, %arg8: memref<1x2xf32, #tpu.memory_space<vmem>>, %arg9: memref<2x1x2xf32, #tpu.memory_space<vmem>>, %arg10: memref<2x128xf32, #tpu.memory_space<vmem>>, %arg11: memref<2x128xf32, #tpu.memory_space<vmem>>, %arg12: memref<2x128xf32, #tpu.memory_space<vmem>>) attributes {dimension_semantics = [#tpu.dimension_semantics<parallel>, #tpu.dimension_semantics<arbitrary>], iteration_bounds = array<i64: 2, 2>, scalar_prefetch = 0 : i64, scratch_operands = 3 : i64, tpu.core_type = #tpu.core_type<tc>, window_params = [{transform_indices = @transform_0, window_bounds = array<i64: 2, 8, 128>}, {transform_indices = @transform_1, window_bounds = array<i64: 2, 1, 128>}, {pipeline_mode = #tpu.pipeline_mode<synchronous>, transform_indices = @transform_2, window_bounds = array<i64: 128, 384>}, {pipeline_mode = #tpu.pipeline_mode<synchronous>, transform_indices = @transform_3, window_bounds = array<i64: 1, 128>}, {pipeline_mode = #tpu.pipeline_mode<synchronous>, transform_indices = @transform_4, window_bounds = array<i64: 128, 2>}, {pipeline_mode = #tpu.pipeline_mode<synchronous>, transform_indices = @transform_5, window_bounds = array<i64: 128, 2>}, {pipeline_mode = #tpu.pipeline_mode<synchronous>, transform_indices = @transform_6, window_bounds = array<i64: 1, 2>}, {transform_indices = @transform_7, window_bounds = array<i64: 2, 1, 2>}]} {
    %c0_i32 = arith.constant 0 : i32
    %0 = arith.cmpi eq, %arg1, %c0_i32 : i32
    %1 = arith.extui %0 : i1 to i32
    %c0_i32_0 = arith.constant 0 : i32
    %2 = arith.cmpi ne, %1, %c0_i32_0 : i32
    scf.if %2 {
      %cst_24 = arith.constant 0xFF800000 : f32
      %51 = vector.broadcast %cst_24 : f32 to vector<2x128xf32>
      %c0_25 = arith.constant 0 : index
      %c0_26 = arith.constant 0 : index
      %52 = vector.load %arg10[%c0_25, %c0_26] : memref<2x128xf32, #tpu.memory_space<vmem>>, vector<2x128xf32>
      tpu.vector_store %arg10[%c0_25, %c0_26], %51 {strides = array<i32>} : memref<2x128xf32, #tpu.memory_space<vmem>>, vector<2x128xf32>,
      %cst_27 = arith.constant 0.000000e+00 : f32
      %53 = vector.broadcast %cst_27 : f32 to vector<2x128xf32>
      %c0_28 = arith.constant 0 : index
      %c0_29 = arith.constant 0 : index
      %54 = vector.load %arg11[%c0_28, %c0_29] : memref<2x128xf32, #tpu.memory_space<vmem>>, vector<2x128xf32>
      tpu.vector_store %arg11[%c0_28, %c0_29], %53 {strides = array<i32>} : memref<2x128xf32, #tpu.memory_space<vmem>>, vector<2x128xf32>,
    } else {
    }
    %c0 = arith.constant 0 : index
    %c0_1 = arith.constant 0 : index
    %c0_2 = arith.constant 0 : index
    %3 = vector.load %arg2[%c0, %c0_1, %c0_2] : memref<2x8x128xbf16, #tpu.memory_space<vmem>>, vector<2x8x128xbf16>
    %4 = vector.shape_cast %3 : vector<2x8x128xbf16> to vector<16x128xbf16>
    %c0_3 = arith.constant 0 : index
    %c0_4 = arith.constant 0 : index
    %5 = vector.load %arg4[%c0_3, %c0_4] : memref<128x384xbf16, #tpu.memory_space<vmem>>, vector<128x384xbf16>
    %cst = arith.constant dense<0.000000e+00> : vector<16x384xf32>
    %6 = tpu.matmul %4, %5, %cst {dimension_numbers = #tpu.dot_dimension_numbers<[1], [0], [0], [1], [0, 0, 1, 1], [], []>} : vector<16x128xbf16>, vector<128x384xbf16>, vector<16x384xf32> -> vector<16x384xf32>
    %7 = vector.shape_cast %6 : vector<16x384xf32> to vector<2x8x384xf32>
    %8 = vector.extract_strided_slice %7 {offsets = [0, 0, 0], sizes = [2, 8, 128], strides = [1, 1, 1]} : vector<2x8x384xf32> to vector<2x8x128xf32>
    %9 = vector.extract_strided_slice %7 {offsets = [0, 0, 128], sizes = [2, 8, 128], strides = [1, 1, 1]} : vector<2x8x384xf32> to vector<2x8x128xf32>
    %10 = vector.extract_strided_slice %7 {offsets = [0, 0, 256], sizes = [2, 8, 128], strides = [1, 1, 1]} : vector<2x8x384xf32> to vector<2x8x128xf32>
    %c0_i32_5 = arith.constant 0 : i32
    %11 = arith.cmpi sgt, %arg1, %c0_i32_5 : i32
    %12 = arith.extui %11 : i1 to i32
    %c0_i32_6 = arith.constant 0 : i32
    %13 = arith.cmpi ne, %12, %c0_i32_6 : i32
    scf.if %13 {
      %c0_24 = arith.constant 0 : index
      %c0_25 = arith.constant 0 : index
      %51 = vector.load %arg10[%c0_24, %c0_25] : memref<2x128xf32, #tpu.memory_space<vmem>>, vector<2x128xf32>
      %c0_26 = arith.constant 0 : index
      %c0_27 = arith.constant 0 : index
      %52 = vector.load %arg12[%c0_26, %c0_27] : memref<2x128xf32, #tpu.memory_space<vmem>>, vector<2x128xf32>
      %53 = vector.extract_strided_slice %10 {offsets = [0, 0, 0], sizes = [2, 1, 128], strides = [1, 1, 1]} : vector<2x8x128xf32> to vector<2x1x128xf32>
      %54 = vector.shape_cast %53 : vector<2x1x128xf32> to vector<2x128xf32>
      %55 = arith.addf %52, %54 : vector<2x128xf32>
      %56 = arith.maximumf %51, %55 : vector<2x128xf32>
      %c0_28 = arith.constant 0 : index
      %c0_29 = arith.constant 0 : index
      %57 = vector.load %arg10[%c0_28, %c0_29] : memref<2x128xf32, #tpu.memory_space<vmem>>, vector<2x128xf32>
      tpu.vector_store %arg10[%c0_28, %c0_29], %56 {strides = array<i32>} : memref<2x128xf32, #tpu.memory_space<vmem>>, vector<2x128xf32>,
    } else {
    }
    %14 = tpu.iota {dimensions = array<i32: 1>} : vector<1x8x1xi32>
    %c0_i32_7 = arith.constant 0 : i32
    %15 = vector.broadcast %c0_i32_7 : i32 to vector<1x8x1xi32>
    %16 = arith.cmpi eq, %14, %15 : vector<1x8x1xi32>
    %c7_i32 = arith.constant 7 : i32
    %17 = vector.broadcast %c7_i32 : i32 to vector<1x8x1xi32>
    %18 = arith.cmpi eq, %14, %17 : vector<1x8x1xi32>
    %c0_8 = arith.constant 0 : index
    %c0_9 = arith.constant 0 : index
    %19 = vector.load %arg11[%c0_8, %c0_9] : memref<2x128xf32, #tpu.memory_space<vmem>>, vector<2x128xf32>
    %20 = vector.shape_cast %19 : vector<2x128xf32> to vector<2x1x128xf32>
    %c1_i32 = arith.constant 1 : i32
    %21 = tpu.dynamic_rotate %8 by %c1_i32 dim 1 : vector<2x8x128xf32>, i32 -> vector<2x8x128xf32>
    %22 = vector.shape_cast %16 : vector<1x8x1xi1> to vector<1x8x1xi1>
    %23 = vector.broadcast %22 : vector<1x8x1xi1> to vector<2x8x128xi1>
    %24 = vector.shape_cast %20 : vector<2x1x128xf32> to vector<2x1x128xf32>
    %25 = vector.broadcast %24 : vector<2x1x128xf32> to vector<2x8x128xf32>
    %26 = arith.select %23, %25, %21 : vector<2x8x128xi1>, vector<2x8x128xf32>
    %27 = arith.addf %9, %26 : vector<2x8x128xf32>
    %c7_i32_10 = arith.constant 7 : i32
    %28 = tpu.dynamic_rotate %10 by %c7_i32_10 dim 1 : vector<2x8x128xf32>, i32 -> vector<2x8x128xf32>
    %cst_11 = arith.constant 0.000000e+00 : f32
    %29 = vector.shape_cast %18 : vector<1x8x1xi1> to vector<1x8x1xi1>
    %30 = vector.broadcast %29 : vector<1x8x1xi1> to vector<2x8x128xi1>
    %31 = vector.broadcast %cst_11 : f32 to vector<2x8x128xf32>
    %32 = arith.select %30, %31, %28 : vector<2x8x128xi1>, vector<2x8x128xf32>
    %33 = arith.addf %27, %32 : vector<2x8x128xf32>
    %c0_12 = arith.constant 0 : index
    %c0_13 = arith.constant 0 : index
    %34 = vector.load %arg10[%c0_12, %c0_13] : memref<2x128xf32, #tpu.memory_space<vmem>>, vector<2x128xf32>
    %cst_14 = arith.constant 0xFF800000 : f32
    %35 = vector.shape_cast %18 : vector<1x8x1xi1> to vector<1x8x1xi1>
    %36 = vector.broadcast %35 : vector<1x8x1xi1> to vector<2x8x128xi1>
    %37 = vector.broadcast %cst_14 : f32 to vector<2x8x128xf32>
    %38 = arith.select %36, %37, %33 : vector<2x8x128xi1>, vector<2x8x128xf32>
    %cst_15 = arith.constant dense<0xFF800000> : vector<2x128xf32>
    %39 = vector.multi_reduction <maximumf>, %38, %cst_15 [1] : vector<2x8x128xf32> to vector<2x128xf32>
    %40 = arith.maximumf %34, %39 : vector<2x128xf32>
    %c0_16 = arith.constant 0 : index
    %c0_17 = arith.constant 0 : index
    %41 = vector.load %arg10[%c0_16, %c0_17] : memref<2x128xf32, #tpu.memory_space<vmem>>, vector<2x128xf32>
    tpu.vector_store %arg10[%c0_16, %c0_17], %40 {strides = array<i32>} : memref<2x128xf32, #tpu.memory_space<vmem>>, vector<2x128xf32>,
    %42 = vector.extract_strided_slice %8 {offsets = [0, 7, 0], sizes = [2, 1, 128], strides = [1, 1, 1]} : vector<2x8x128xf32> to vector<2x1x128xf32>
    %43 = vector.shape_cast %42 : vector<2x1x128xf32> to vector<2x128xf32>
    %c0_18 = arith.constant 0 : index
    %c0_19 = arith.constant 0 : index
    %44 = vector.load %arg11[%c0_18, %c0_19] : memref<2x128xf32, #tpu.memory_space<vmem>>, vector<2x128xf32>
    tpu.vector_store %arg11[%c0_18, %c0_19], %43 {strides = array<i32>} : memref<2x128xf32, #tpu.memory_space<vmem>>, vector<2x128xf32>,
    %45 = vector.extract_strided_slice %27 {offsets = [0, 7, 0], sizes = [2, 1, 128], strides = [1, 1, 1]} : vector<2x8x128xf32> to vector<2x1x128xf32>
    %46 = vector.shape_cast %45 : vector<2x1x128xf32> to vector<2x128xf32>
    %c0_20 = arith.constant 0 : index
    %c0_21 = arith.constant 0 : index
    %47 = vector.load %arg12[%c0_20, %c0_21] : memref<2x128xf32, #tpu.memory_space<vmem>>, vector<2x128xf32>
    tpu.vector_store %arg12[%c0_20, %c0_21], %46 {strides = array<i32>} : memref<2x128xf32, #tpu.memory_space<vmem>>, vector<2x128xf32>,
    %c1_i32_22 = arith.constant 1 : i32
    %48 = arith.cmpi eq, %arg1, %c1_i32_22 : i32
    %49 = arith.extui %48 : i1 to i32
    %c0_i32_23 = arith.constant 0 : i32
    %50 = arith.cmpi ne, %49, %c0_i32_23 : i32
    scf.if %50 {
      %c0_24 = arith.constant 0 : index
      %c0_25 = arith.constant 0 : index
      %51 = vector.load %arg10[%c0_24, %c0_25] : memref<2x128xf32, #tpu.memory_space<vmem>>, vector<2x128xf32>
      %c0_26 = arith.constant 0 : index
      %c0_27 = arith.constant 0 : index
      %52 = vector.load %arg12[%c0_26, %c0_27] : memref<2x128xf32, #tpu.memory_space<vmem>>, vector<2x128xf32>
      %53 = arith.maximumf %51, %52 : vector<2x128xf32>
      %c0_28 = arith.constant 0 : index
      %c0_29 = arith.constant 0 : index
      %54 = vector.load %arg5[%c0_28, %c0_29] : memref<1x128xf32, #tpu.memory_space<vmem>>, vector<1x128xf32>
      %55 = vector.broadcast %54 : vector<1x128xf32> to vector<2x128xf32>
      %56 = arith.addf %53, %55 : vector<2x128xf32>
      %cst_30 = arith.constant 0.000000e+00 : f32
      %57 = vector.broadcast %cst_30 : f32 to vector<2x128xf32>
      %58 = arith.maximumf %56, %57 : vector<2x128xf32>
      %c0_31 = arith.constant 0 : index
      %c0_32 = arith.constant 0 : index
      %c0_33 = arith.constant 0 : index
      %59 = vector.load %arg3[%c0_31, %c0_32, %c0_33] : memref<2x1x128xf32, #tpu.memory_space<vmem>>, vector<2x1x128xf32>
      %60 = vector.shape_cast %59 : vector<2x1x128xf32> to vector<2x128xf32>
      %c0_34 = arith.constant 0 : index
      %c0_35 = arith.constant 0 : index
      %61 = vector.load %arg6[%c0_34, %c0_35] : memref<128x2xf32, #tpu.memory_space<vmem>>, vector<128x2xf32>
      %cst_36 = arith.constant dense<0.000000e+00> : vector<2x2xf32>
      %62 = tpu.matmul %60, %61, %cst_36 {dimension_numbers = #tpu.dot_dimension_numbers<[1], [0], [0], [1], [0, 0, 1, 1], [], []>} : vector<2x128xf32>, vector<128x2xf32>, vector<2x2xf32> -> vector<2x2xf32>
      %c0_37 = arith.constant 0 : index
      %c0_38 = arith.constant 0 : index
      %63 = vector.load %arg7[%c0_37, %c0_38] : memref<128x2xf32, #tpu.memory_space<vmem>>, vector<128x2xf32>
      %cst_39 = arith.constant dense<0.000000e+00> : vector<2x2xf32>
      %64 = tpu.matmul %58, %63, %cst_39 {dimension_numbers = #tpu.dot_dimension_numbers<[1], [0], [0], [1], [0, 0, 1, 1], [], []>} : vector<2x128xf32>, vector<128x2xf32>, vector<2x2xf32> -> vector<2x2xf32>
      %65 = arith.addf %62, %64 : vector<2x2xf32>
      %c0_40 = arith.constant 0 : index
      %c0_41 = arith.constant 0 : index
      %66 = vector.load %arg8[%c0_40, %c0_41] : memref<1x2xf32, #tpu.memory_space<vmem>>, vector<1x2xf32>
      %67 = vector.broadcast %66 : vector<1x2xf32> to vector<2x2xf32>
      %68 = arith.addf %65, %67 : vector<2x2xf32>
      %69 = vector.shape_cast %68 : vector<2x2xf32> to vector<2x1x2xf32>
      %c0_42 = arith.constant 0 : index
      %c0_43 = arith.constant 0 : index
      %c0_44 = arith.constant 0 : index
      %70 = vector.load %arg9[%c0_42, %c0_43, %c0_44] : memref<2x1x2xf32, #tpu.memory_space<vmem>>, vector<2x1x2xf32>
      tpu.vector_store %arg9[%c0_42, %c0_43, %c0_44], %69 {strides = array<i32>} : memref<2x1x2xf32, #tpu.memory_space<vmem>>, vector<2x1x2xf32>,
    } else {
    }
    return
  }
  func.func @transform_0(%arg0: i32, %arg1: i32) -> (i32, i32, i32) {
    %c0_i32 = arith.constant 0 : i32
    %c0_i32_0 = arith.constant 0 : i32
    return %arg0, %arg1, %c0_i32 : i32, i32, i32
  }
  func.func @transform_1(%arg0: i32, %arg1: i32) -> (i32, i32, i32) {
    %c0_i32 = arith.constant 0 : i32
    %c0_i32_0 = arith.constant 0 : i32
    %c0_i32_1 = arith.constant 0 : i32
    return %arg0, %c0_i32, %c0_i32_0 : i32, i32, i32
  }
  func.func @transform_2(%arg0: i32, %arg1: i32) -> (i32, i32) {
    %c0_i32 = arith.constant 0 : i32
    %c0_i32_0 = arith.constant 0 : i32
    %c0_i32_1 = arith.constant 0 : i32
    return %c0_i32, %c0_i32_0 : i32, i32
  }
  func.func @transform_3(%arg0: i32, %arg1: i32) -> (i32, i32) {
    %c0_i32 = arith.constant 0 : i32
    %c0_i32_0 = arith.constant 0 : i32
    %c0_i32_1 = arith.constant 0 : i32
    return %c0_i32, %c0_i32_0 : i32, i32
  }
  func.func @transform_4(%arg0: i32, %arg1: i32) -> (i32, i32) {
    %c0_i32 = arith.constant 0 : i32
    %c0_i32_0 = arith.constant 0 : i32
    %c0_i32_1 = arith.constant 0 : i32
    return %c0_i32, %c0_i32_0 : i32, i32
  }
  func.func @transform_5(%arg0: i32, %arg1: i32) -> (i32, i32) {
    %c0_i32 = arith.constant 0 : i32
    %c0_i32_0 = arith.constant 0 : i32
    %c0_i32_1 = arith.constant 0 : i32
    return %c0_i32, %c0_i32_0 : i32, i32
  }
  func.func @transform_6(%arg0: i32, %arg1: i32) -> (i32, i32) {
    %c0_i32 = arith.constant 0 : i32
    %c0_i32_0 = arith.constant 0 : i32
    %c0_i32_1 = arith.constant 0 : i32
    return %c0_i32, %c0_i32_0 : i32, i32
  }
  func.func @transform_7(%arg0: i32, %arg1: i32) -> (i32, i32, i32) {
    %c0_i32 = arith.constant 0 : i32
    %c0_i32_0 = arith.constant 0 : i32
    %c0_i32_1 = arith.constant 0 : i32
    return %arg0, %c0_i32, %c0_i32_0 : i32, i32, i32
  }
}

</mosaic_0001>

<bundles_post_ra>
// kernel: tpu_custom_call.1
= control target key start
LH: loop header
LB: loop body
LE: loop exit
PB: predicated region body
PF: predicated region fallthrough
CT: control target
= control target key end

     0   :  { %s1477_s24 = smov 0   ;;  %s1479_s25 = smov 0   ;;  %s1783_s0 = inlined_call_operand.vmem [shape: bf16[4,16,128], index: 0, kind: input, shape index: {}]   ;;  %s1784_s1 = inlined_call_operand.vmem [shape: f32[4,1,128], index: 1, kind: input, shape index: {}]   ;;  %s1785_s2 = inlined_call_operand.vmem [shape: bf16[128,384], index: 2, kind: input, shape index: {}]   ;;  %s1786_s3 = inlined_call_operand.vmem [shape: f32[1,128], index: 3, kind: input, shape index: {}]   ;;  %s1787_s4 = inlined_call_operand.vmem [shape: f32[128,2], index: 4, kind: input, shape index: {}]   ;;  %s1788_s5 = inlined_call_operand.vmem [shape: f32[128,2], index: 5, kind: input, shape index: {}]   ;;  %s1789_s6 = inlined_call_operand.vmem [shape: f32[1,2], index: 6, kind: input, shape index: {}]   ;;  %s1790_s7 = inlined_call_operand.vmem [shape: f32[4,1,2], index: 7, kind: output, shape index: {}]  }
   0x1   :  { %s1481_s26 = smov 0   ;;  %s1483_s27 = smov 0  }
   0x2   :  { %s1485_s28 = smov 0   ;;  %s1487_s29 = smov 0  }
   0x3   :  { %s1489_s30 = smov 0  }
   0x4 LB: > { %s26_s8 = sadd.s32 1, %s1418_s28  ;;  %s29_s9 = sadd.s32 1, %s1422_s29  ;;  %s1426_s30 = sphi %s1489_s30, %s17_s30   ;;  %s1422_s29 = sphi %s1487_s29, %s1796_s29   ;;  %s1418_s28 = sphi %s1485_s28, %s1795_s28   ;;  %s1414_s27 = sphi %s1483_s27, %s1794_s27   ;;  %s1410_s26 = sphi %s1481_s26, %s1793_s26   ;;  %s1406_s25 = sphi %s1479_s25, %s1792_s25   ;;  %s1402_s24 = sphi %s1477_s24, %s1791_s24  }
   0x5   : > { %p27_p0 = scmp.ge.s32.totalorder %s26_s8, 2  ;;  %p45_p1 = scmp.ne.s32.totalorder %s1406_s25, %s1402_s24 }
   0x6   : > { %p46_p2 = scmp.eq.s32.totalorder %s1426_s30, 0  ;;  %s38_s13 = sadd.s32 1, %s1406_s25 }
   0x7   : > { %s1798_s8 = smov (%p27_p0, %s26_s8), 0  ;;  %s1800_s9 = smov (!%p27_p0, %s29_s9), %s1422_s29 }
   0x8   : > { %p47_p3 = por %p46_p2, %p45_p1  ;;  %p31_p4 = scmp.ge.s32.totalorder %s1800_s9, 2 }
   0x9   : > { %s34_s10 = ssub.s32 %s1418_s28, %s1798_s8  ;;  %p1050_p6 = scmp.ge.s32.totalorder %s1426_s30, 4 }
   0xa   : > { %s1802_s9 = smov (%p31_p4, %s1800_s9), 0 }
   0xb   : > { %s33_s11 = ssub.s32 %s1422_s29, %s1802_s9  ;;  %243 = sbr.rel (%p1050_p6) target bundleno = 25 (0x19), region = 36 }
   0xc   : > { %s35_s12 = sor.u32 %s34_s10, %s33_s11 }
   0xd   : > { %p36_p5 = scmp.eq.s32.totalorder %s35_s12, 0 }
   0xf   : > { %s1528_s14 = scalar_select %p36_p5, %s1406_s25, %s38_s13  }
  0x12   : > { %246 = sbr.rel (!%p47_p3) target bundleno = 25 (0x19), region = 40  ;;  %s248_s15 = sand.u32 (%p47_p3), 1, %s1406_s25  }
  0x13   : > { %s1092_s16 = sshll.u32 (%p47_p3), %s1422_s29, 2  ;;  %s1051_s17 = sshll.u32 (%p47_p3), %s248_s15, 3 }
  0x14   : > { %s253_s18 = sadd.s32 (%p47_p3), %s1418_s28, %s1092_s16  ;;  %s250_s23 = scalar_lea.vmem (%p47_p3), [#allocation5], %s1051_s17 }
  0x15   : > { %s1054_s19 = sshll.u32 (%p47_p3), %s253_s18, 2 }
  0x16   : > { %s255_s22 = scalar_lea.vmem (%p47_p3), %s1783_s0, %s1054_s19 }
  0x17   : > { %v271_v0 = vld [vmem:[%s255_s22] sm:$0xf] (%p47_p3)  ;;  %v273_v1 = vld [vmem:[%s255_s22 + $0x8] sm:$0xf] (%p47_p3) }
  0x18   : > { %272 = vst [vmem:[%s250_s23] sm:$0xf] (%p47_p3), %v271_v0  ;;  %274 = vst [vmem:[%s250_s23 + $0x4] sm:$0xf] (%p47_p3), %v273_v1 }
  0x19 PF: > { %p1055_p7 = scmp.ge.s32.totalorder %s1426_s30, 1  ;;  %p308_p8 = scmp.lt.s32.totalorder %s1426_s30, 5 }
  0x1b   : > { %p309_p9 = pnand %p1055_p7, %p308_p8 }
  0x1c   : > { %s315_s10 = sand.u32 (!%p309_p9), 1, %s1402_s24   ;;  %s1057_s11 = sshll.u32 (!%p309_p9), %s1414_s27, 1 }
  0x1d   : > { %312 = sbr.rel (%p309_p9) target bundleno = 567 (0x237), region = 85  ;;  %s1541_s12 = sshll.u32 (!%p309_p9), %s315_s10, 3 }
  0x1e   : > { %p351_p10 = scmp.lt.s32.totalorder (!%p309_p9), %s1057_s11, 3  ;;  %s317_s20 = scalar_lea.vmem (!%p309_p9), [#allocation5], %s1541_s12 }
  0x1f   : > { %p1059_p11 = scmp.ne.s32.totalorder (!%p309_p9), %s1410_s26, 0 }
  0x24   : > { %s1804_s11 = smov (!%p351_p10, %s1057_s11), 3  ;;  %364 = sbr.rel (%p1059_p11) target bundleno = 43 (0x2b), region = 93 }
  0x25   : > { %s1546_s16 = scalar_lea.vmem %s1784_s1, %s1804_s11  ;;  %s1551_s19 = scalar_lea.vmem %s1790_s7, %s1804_s11  ;;  %v1428_v2 = vmov (!%p1059_p11), -inf   ;;  %v1429_v3 = vmov (!%p1059_p11), 0.0  }
  0x26   : > { %365 = vst [vmem:[#allocation2] sm:$0x3] (!%p1059_p11), %v1428_v2  ;;  %366 = vst [vmem:[#allocation3] sm:$0x3] (!%p1059_p11), %v1429_v3 }
  0x2b PF: > { %v1339_v4 = vld [vmem:[%s1785_s2 + $0x4] ss:$12 sps:$4 sm:$0xff]   ;;  %v1430_v5 = vmov 0.0   ;;  %v1341_v6 = vld [vmem:[%s1785_s2 + $0x8] ss:$12 sps:$4 sm:$0xff]   ;;  %vm1431_vm0 = vmmov 0  }
  0x2c   : > { %1136 = vmatprep.subr.bf16.mxu1 %v1430_v5  ;;  %1152 = vmatprep.mubr.msk.bf16.mxu1 %vm1431_vm0, %v1430_v5  ;;  %v1342_v7 = vld [vmem:[%s1785_s2] ss:$12 sps:$4 sm:$0xff]   ;;  %v1343_v8 = vld [vmem:[%s1785_s2 + $0x1c] ss:$12 sps:$4 sm:$0xff]   ;;  %v1432_v9 = vmov 0   ;;  %p1085_p12 = scmp.le.s32.totalorder %s1410_s26, 0 }
  0x2d   : > { %535 = vmatprep.subr.bf16.mxu0 %v1339_v4  ;;  %1137 = vmatpush3.bf16.msra.mxu1 %v1341_v6  ;;  %v1345_v10 = vld [vmem:[%s1785_s2 + $0x20] ss:$12 sps:$4 sm:$0xff]   ;;  %v1346_v11 = vld [vmem:[%s1785_s2 + $0x18] ss:$12 sps:$4 sm:$0xff]   ;;  %v1350_v14 = vld [vmem:[%s1785_s2 + $0x30] ss:$12 sps:$4 sm:$0xff]  }
  0x2e   : > { %567 = vmatprep.mubr.bf16.mxu0 %v1432_v9  ;;  %536 = vmatpush1.bf16.msra.mxu0 %v1342_v7  ;;  %v1347_v12 = vld [vmem:[%s1785_s2 + $0x34] ss:$12 sps:$4 sm:$0xff]   ;;  %v1349_v13 = vld [vmem:[%s1785_s2 + $0x38] ss:$12 sps:$4 sm:$0xff]   ;;  %v1353_v16 = vld [vmem:[%s1785_s2 + $0x50] ss:$12 sps:$4 sm:$0xff]  }
  0x2f   : > { %1138 = vmatprep.subr.bf16.mxu1 %v1430_v5  ;;  %537 = vmatprep.subr.bf16.mxu0 %v1343_v8  ;;  %v1351_v15 = vld [vmem:[%s1785_s2 + $0x4c] ss:$12 sps:$4 sm:$0xff]   ;;  %v1354_v17 = vld [vmem:[%s1785_s2 + $0x48] ss:$12 sps:$4 sm:$0xff]   ;;  %v1355_v18 = vld [vmem:[%s1785_s2 + $0x64] ss:$12 sps:$4 sm:$0xff]  }
  0x30   : > { %v1357_v19 = vld [vmem:[%s1785_s2 + $0x68] ss:$12 sps:$4 sm:$0xff]   ;;  %v1358_v20 = vld [vmem:[%s1785_s2 + $0x60] ss:$12 sps:$4 sm:$0xff]   ;;  %v1362_v23 = vld [vmem:[%s1785_s2 + $0x78] ss:$12 sps:$4 sm:$0xff]  }
  0x31   : > { %1139 = vmatpush3.bf16.msra.mxu1 %v1345_v10  ;;  %v1359_v21 = vld [vmem:[%s1785_s2 + $0x7c] ss:$12 sps:$4 sm:$0xff]   ;;  %v1361_v22 = vld [vmem:[%s1785_s2 + $0x80] ss:$12 sps:$4 sm:$0xff]   ;;  %v1365_v25 = vld [vmem:[%s1785_s2 + $0x98] ss:$12 sps:$4 sm:$0xff]  }
  0x32   : > { %538 = vmatpush1.bf16.msra.mxu0 %v1346_v11  ;;  %1140 = vmatprep.subr.bf16.mxu1 %v1430_v5  ;;  %v1363_v24 = vld [vmem:[%s1785_s2 + $0x94] ss:$12 sps:$4 sm:$0xff]   ;;  %v1366_v26 = vld [vmem:[%s1785_s2 + $0x90] ss:$12 sps:$4 sm:$0xff]   ;;  %v1367_v27 = vld [vmem:[%s1785_s2 + $0xac] ss:$12 sps:$4 sm:$0xff]  }
  0x33   : > { %539 = vmatprep.subr.bf16.mxu0 %v1347_v12  ;;  %v1369_v28 = vld [vmem:[%s1785_s2 + $0xb0] ss:$12 sps:$4 sm:$0xff]   ;;  %v1370_v29 = vld [vmem:[%s1785_s2 + $0xa8] ss:$12 sps:$4 sm:$0xff]   ;;  %v624_v39 = vld [vmem:[#allocation4] sm:$0x3] (!%p1085_p12) }
  0x34   : > { %v1371_v30 = vld [vmem:[%s317_s20] sm:$0xff]   ;;  %vm628_vm1 = vcmask (!%p1085_p12), 1041409   ;;  %v623_v41 = vld [vmem:[#allocation2] sm:$0x3] (!%p1085_p12) }
  0x35   : > { %1141 = vmatpush3.bf16.msra.mxu1 %v1349_v13 }
  0x36   : > { %540 = vmatpush1.bf16.msra.mxu0 %v1350_v14  ;;  %1142 = vmatprep.subr.bf16.mxu1 %v1430_v5 }
  0x37   : > { %541 = vmatprep.subr.bf16.mxu0 %v1351_v15 }
  0x39   : > { %1143 = vmatpush3.bf16.msra.mxu1 %v1353_v16 }
  0x3a   : > { %542 = vmatpush1.bf16.msra.mxu0 %v1354_v17  ;;  %1144 = vmatprep.subr.bf16.mxu1 %v1430_v5 }
  0x3b   : > { %543 = vmatprep.subr.bf16.mxu0 %v1355_v18 }
  0x3d   : > { %1145 = vmatpush3.bf16.msra.mxu1 %v1357_v19 }
  0x3e   : > { %544 = vmatpush1.bf16.msra.mxu0 %v1358_v20  ;;  %1146 = vmatprep.subr.bf16.mxu1 %v1430_v5 }
  0x3f   : > { %545 = vmatprep.subr.bf16.mxu0 %v1359_v21 }
  0x41   : > { %1147 = vmatpush3.bf16.msra.mxu1 %v1361_v22 }
  0x42   : > { %546 = vmatpush1.bf16.msra.mxu0 %v1362_v23  ;;  %1148 = vmatprep.subr.bf16.mxu1 %v1430_v5 }
  0x43   : > { %547 = vmatprep.subr.bf16.mxu0 %v1363_v24 }
  0x45   : > { %1149 = vmatpush3.bf16.msra.mxu1 %v1365_v25 }
  0x46   : > { %548 = vmatpush1.bf16.msra.mxu0 %v1366_v26  ;;  %1150 = vmatprep.subr.bf16.mxu1 %v1430_v5 }
  0x47   : > { %549 = vmatprep.subr.bf16.mxu0 %v1367_v27 }
  0x49   : > { %1151 = vmatpush3.bf16.msra.mxu1 %v1369_v28 }
  0x4a   : > { %550 = vmatpush1.bf16.msra.mxu0 %v1370_v29 }
  0x4c   : > { %1153 = vmatmul.mubr.bf16.vlgmr.msra.gmra.mrb[0].mxu1 %v1371_v30 }
  0x4d   : > { %568 = vmatmul.mubr.bf16.vlgmr.msra.gmra.mrb[0].mxu0 %v1371_v30 }
 0x11d   : > { %622 = sbr.rel (%p1085_p12) target bundleno = 298 (0x12a), region = 97 }
 0x11f   : > { %v612_v31 = vpop.f32.mrb[0].mxu1 }
 0x120   : > { %v569_v32 = vpop.f32.mrb[0].mxu0  ;;  %v1154_v33 = vpop.f32.mrb[1].mxu1 }
 0x121   : > { %v571_v34 = vpop.f32.mrb[1].mxu0  ;;  %v615_v35 = vpop.f32.mrb[2].mxu1 }
 0x122   : > { %v573_v36 = vpop.f32.mrb[2].mxu0  ;;  %v1155_v37 = vpop.f32.mrb[3].mxu1  ;;  %v627_v40 = vrot.slane (!%p1085_p12), %v615_v35, 7 }
 0x123   : > { %v575_v38 = vpop.f32.mrb[3].mxu0 }
 0x124   : > { %v629_v42 = vsel %vm628_vm1, %v627_v40, %v612_v31 }
 0x125   : > { %v631_v43 = vadd.f32 %v629_v42, %v624_v39 }
 0x127   : > { %v632_v44 = vmax.f32 %v623_v41, %v631_v43 }
 0x129   : > { %633 = vst [vmem:[#allocation2] sm:$0x3] %v632_v44 }
 0x12a PF: > { %v634_v45 = vlaneseq  ;;  %v1086_v46 = vld.sshfl [vmem:[#allocation3] sm:$0x11 pattern:$0x75316420]  ;;  %v1433_v47 = vmov 1966171168  }
 0x12b   : > { %v649_v48 = vunpack.c.l.s4 %v1433_v47  ;;  %v663_v49 = vrot.slane %v573_v36, 7  ;;  %715 = vst [vmem:[#allocation3 - $0x7] sm:$0x80] %v569_v32  ;;  %v647_v51 = vcombine.high %v1086_v46, %v1086_v46  ;;  %v662_v55 = vrot.slane %v569_v32, 7  ;;  %p1087_p13 = scmp.ne.s32.totalorder %s1410_s26, 1 }
 0x12c   : > { %v635_v50 = vshrl.u32 %v634_v45, 7  ;;  %v680_v58 = vrot.slane %v612_v31, 1  ;;  %v681_v59 = vrot.slane %v615_v35, 1  ;;  %vm705_vm4 = vcmask 1041409   ;;  %v758_v24 = vld [vmem:[%s1788_s5] sm:$0xff] (!%p1087_p13)  ;;  %v759_v25 = vld [vmem:[%s1788_s5 + $0x8] sm:$0xff] (!%p1087_p13) }
 0x12d   : > { %v650_v52 = vunpack.c.0.s8 %v649_v48  ;;  %716 = vst [vmem:[#allocation3 + $0x1] sm:$0x1] %v663_v49  ;;  %v742_v26 = vld [vmem:[%s1787_s4] sm:$0xff] (!%p1087_p13)  ;;  %v1434_v27 = vmov (!%p1087_p13), 0.0|0.0   ;;  %v1227_v28 = vpack.c.bf16 (!%p1087_p13), %v759_v25, %v758_v24  ;;  %v743_v29 = vld [vmem:[%s1787_s4 + $0x8] sm:$0xff] (!%p1087_p13)  ;;  %v760_v30 = vld [vmem:[%s1788_s5 + $0x10] sm:$0xff] (!%p1087_p13) }
 0x12e   : > { %v668_v54 = vsub.s32 0, %v635_v50  ;;  %vm636_vm2 = vcmp.eq.s32.totalorder %v635_v50, 0  ;;  %vm637_vm3 = vcmp.eq.s32.totalorder %v635_v50, 7  ;;  %1226 = vmatprep.subr.bf16.mxu0 (!%p1087_p13), %v1434_v27  ;;  %1250 = vmatprep.subr.bf16.mxu1 (!%p1087_p13), %v1434_v27  ;;  %v761_v31 = vld [vmem:[%s1788_s5 + $0x18] sm:$0xff] (!%p1087_p13)  ;;  %v1251_v32 = vpack.c.bf16 (!%p1087_p13), %v743_v29, %v742_v26  ;;  %v744_v33 = vld [vmem:[%s1787_s4 + $0x10] sm:$0xff] (!%p1087_p13)  ;;  %v763_v39 = vld [vmem:[%s1788_s5 + $0x28] sm:$0xff] (!%p1087_p13) }
 0x12f   : > { %v1630_v53 = vsub.s32 %v650_v52, %v635_v50  ;;  %v684_v0 = vsel %vm637_vm3, 0.0, %v680_v58  ;;  %v685_v1 = vsel %vm637_vm3, 0.0, %v681_v59  ;;  %vm1435_vm5 = vmmov (!%p1087_p13), 0   ;;  %1228 = vmatpush3.bf16.msra.mxu0 (!%p1087_p13), %v1227_v28  ;;  %v746_v40 = vld [vmem:[%s1787_s4 + $0x20] sm:$0xff] (!%p1087_p13)  ;;  %v747_v41 = vld [vmem:[%s1787_s4 + $0x28] sm:$0xff] (!%p1087_p13)  ;;  %v764_v44 = vld [vmem:[%s1788_s5 + $0x30] sm:$0xff] (!%p1087_p13) }
 0x130   : > { %v688_v19 = vld [vmem:[#allocation2] sm:$0x3]  ;;  %v1436_v35 = vmov (!%p1087_p13), 0.0   ;;  %v1230_v36 = vpack.c.bf16 (!%p1087_p13), %v761_v31, %v760_v30  ;;  %1252 = vmatpush3.bf16.msra.mxu1 (!%p1087_p13), %v1251_v32  ;;  %1229 = vmatprep.subr.bf16.mxu0 (!%p1087_p13), %v1434_v27  ;;  %v1257_v43 = vpack.c.bf16 (!%p1087_p13), %v747_v41, %v746_v40  ;;  %v765_v45 = vld [vmem:[%s1788_s5 + $0x38] sm:$0xff] (!%p1087_p13)  ;;  %v752_v59 = vld [vmem:[%s1787_s4 + $0x50] sm:$0xff] (!%p1087_p13)  ;;  %vm965_vm6 = vcmask (!%p1087_p13), 8192  }
 0x131   : > { %v654_v56 = vrot.slane %v1086_v46, %v1630_v53  ;;  %v661_v57 = vrot.slane %v647_v51, %v1630_v53  ;;  %1188 = vmatprep.mubr.msk.f32.mxu0 (!%p1087_p13), %vm1435_vm5, %v1436_v35  ;;  %1223 = vmatprep.mubr.msk.f32.mxu1 (!%p1087_p13), %vm1435_vm5, %v1436_v35  ;;  %v748_v46 = vld [vmem:[%s1787_s4 + $0x30] sm:$0xff] (!%p1087_p13)  ;;  %v749_v47 = vld [vmem:[%s1787_s4 + $0x38] sm:$0xff] (!%p1087_p13)  ;;  %v1236_v48 = vpack.c.bf16 (!%p1087_p13), %v765_v45, %v764_v44  ;;  %v766_v50 = vld [vmem:[%s1788_s5 + $0x40] sm:$0xff] (!%p1087_p13) }
 0x132   : > { %1253 = vmatprep.subr.bf16.mxu1 (!%p1087_p13), %v1434_v27  ;;  %v767_v51 = vld [vmem:[%s1788_s5 + $0x48] sm:$0xff] (!%p1087_p13)  ;;  %v750_v52 = vld [vmem:[%s1787_s4 + $0x40] sm:$0xff] (!%p1087_p13)  ;;  %v769_v58 = vld [vmem:[%s1788_s5 + $0x58] sm:$0xff] (!%p1087_p13) }
 0x133   : > { %v669_v60 = vrot.slane %v654_v56, %v668_v54  ;;  %v673_v61 = vrot.slane %v661_v57, %v668_v54  ;;  %1231 = vmatpush3.bf16.msra.mxu0 (!%p1087_p13), %v1230_v36  ;;  %v751_v54 = vld [vmem:[%s1787_s4 + $0x48] sm:$0xff] (!%p1087_p13)  ;;  %v768_v57 = vld [vmem:[%s1788_s5 + $0x50] sm:$0xff] (!%p1087_p13)  ;;  %v1089_v24 = vld [vmem:[%s1789_s6] ss:$0 sm:$0xff] (!%p1087_p13) }
 0x134   : > { %1232 = vmatprep.subr.bf16.mxu0 (!%p1087_p13), %v1434_v27  ;;  %v1263_v56 = vpack.c.bf16 (!%p1087_p13), %v751_v54, %v750_v52 }
 0x135   : > { %v676_v62 = vsel %vm636_vm2, %v669_v60, %v662_v55  ;;  %v677_v63 = vsel %vm636_vm2, %v673_v61, %v663_v49  ;;  %v1260_v49 = vpack.c.bf16 (!%p1087_p13), %v749_v47, %v748_v46  ;;  %v1239_v55 = vpack.c.bf16 (!%p1087_p13), %v767_v51, %v766_v50  ;;  %v753_v60 = vld [vmem:[%s1787_s4 + $0x58] sm:$0xff] (!%p1087_p13) }
 0x136   : > { %v678_v2 = vadd.f32 %v676_v62, %v571_v34  ;;  %v679_v3 = vadd.f32 %v677_v63, %v575_v38  ;;  %v745_v34 = vld [vmem:[%s1787_s4 + $0x18] sm:$0xff] (!%p1087_p13)  ;;  %v762_v38 = vld [vmem:[%s1788_s5 + $0x20] sm:$0xff] (!%p1087_p13)  ;;  %v1242_v61 = vpack.c.bf16 (!%p1087_p13), %v769_v58, %v768_v57 }
 0x137   : > { %v1254_v37 = vpack.c.bf16 (!%p1087_p13), %v745_v34, %v744_v33  ;;  %v1233_v42 = vpack.c.bf16 (!%p1087_p13), %v763_v39, %v762_v38  ;;  %v770_v62 = vld [vmem:[%s1788_s5 + $0x60] sm:$0xff] (!%p1087_p13) }
 0x138   : > { %v686_v4 = vadd.f32 %v684_v0, %v678_v2  ;;  %v687_v5 = vadd.f32 %v685_v1, %v679_v3  ;;  %722 = vst [vmem:[#allocation4 - $0x7] sm:$0x80] %v678_v2  ;;  %v719_v6 = vrot.slane %v679_v3, 7  ;;  %v1266_v1 = vpack.c.bf16 (!%p1087_p13), %v753_v60, %v752_v59  ;;  %v771_v2 = vld [vmem:[%s1788_s5 + $0x68] sm:$0xff] (!%p1087_p13)  ;;  %v740_v3 = vld [vmem:[%s1546_s16] sm:$0x1] (!%p1087_p13) }
 0x139   : > { %1255 = vmatpush3.bf16.msra.mxu1 (!%p1087_p13), %v1254_v37  ;;  %1234 = vmatpush3.bf16.msra.mxu0 (!%p1087_p13), %v1233_v42 }
 0x13a   : > { %v689_v7 = vsel %vm637_vm3, -inf, %v686_v4  ;;  %v690_v8 = vsel %vm637_vm3, -inf, %v687_v5  ;;  %723 = vst [vmem:[#allocation4 + $0x1] sm:$0x1] %v719_v6  ;;  %1256 = vmatprep.subr.bf16.mxu1 (!%p1087_p13), %v1434_v27  ;;  %1235 = vmatprep.subr.bf16.mxu0 (!%p1087_p13), %v1434_v27  ;;  %v741_v4 = vld [vmem:[%s1546_s16 + $0x1] sm:$0x1] (!%p1087_p13) }
 0x13b   : > { %v691_v9 = vrot.slane %v689_v7, 4  ;;  %v697_v10 = vrot.slane %v690_v8, 4  ;;  %v754_v5 = vld [vmem:[%s1787_s4 + $0x60] sm:$0xff] (!%p1087_p13)  ;;  %v755_v6 = vld [vmem:[%s1787_s4 + $0x68] sm:$0xff] (!%p1087_p13) }
 0x13d   : > { %v692_v11 = vmax.f32 %v689_v7, %v691_v9  ;;  %v698_v12 = vmax.f32 %v690_v8, %v697_v10  ;;  %1258 = vmatpush3.bf16.msra.mxu1 (!%p1087_p13), %v1257_v43  ;;  %1237 = vmatpush3.bf16.msra.mxu0 (!%p1087_p13), %v1236_v48  ;;  %v1245_v8 = vpack.c.bf16 (!%p1087_p13), %v771_v2, %v770_v62  ;;  %v1088_v9 = vld [vmem:[%s1786_s3] ss:$0 sm:$0xff] (!%p1087_p13) }
 0x13e   : > { %1259 = vmatprep.subr.bf16.mxu1 (!%p1087_p13), %v1434_v27  ;;  %1238 = vmatprep.subr.bf16.mxu0 (!%p1087_p13), %v1434_v27  ;;  %v846_v10 = vcombine.low (!%p1087_p13), %v740_v3, %v741_v4 }
 0x13f   : > { %v693_v13 = vrot.slane %v692_v11, 2  ;;  %v699_v14 = vrot.slane %v698_v12, 2 }
 0x141   : > { %v694_v15 = vmax.f32 %v692_v11, %v693_v13  ;;  %v700_v16 = vmax.f32 %v698_v12, %v699_v14  ;;  %1261 = vmatpush3.bf16.msra.mxu1 (!%p1087_p13), %v1260_v49  ;;  %1240 = vmatpush3.bf16.msra.mxu0 (!%p1087_p13), %v1239_v55  ;;  %v729_v0 = vld [vmem:[#allocation4] sm:$0x3] (!%p1087_p13)  ;;  %v1269_v11 = vpack.c.bf16 (!%p1087_p13), %v755_v6, %v754_v5  ;;  %v772_v12 = vld [vmem:[%s1788_s5 + $0x70] sm:$0xff] (!%p1087_p13)  ;;  %v773_v13 = vld [vmem:[%s1788_s5 + $0x78] sm:$0xff] (!%p1087_p13) }
 0x142   : > { %1262 = vmatprep.subr.bf16.mxu1 (!%p1087_p13), %v1434_v27  ;;  %1241 = vmatprep.subr.bf16.mxu0 (!%p1087_p13), %v1434_v27  ;;  %v756_v14 = vld [vmem:[%s1787_s4 + $0x70] sm:$0xff] (!%p1087_p13) }
 0x143   : > { %v695_v17 = vrot.slane %v694_v15, 1  ;;  %v701_v18 = vrot.slane %v700_v16, 1 }
 0x144   : > { %727 = sbr.rel (%p1087_p13) target bundleno = 567 (0x237), region = 101 }
 0x145   : > { %v696_v20 = vmax.f32 %v694_v15, %v695_v17  ;;  %v702_v21 = vmax.f32 %v700_v16, %v701_v18  ;;  %1264 = vmatpush3.bf16.msra.mxu1 (!%p1087_p13), %v1263_v56  ;;  %1243 = vmatpush3.bf16.msra.mxu0 (!%p1087_p13), %v1242_v61  ;;  %v757_v15 = vld [vmem:[%s1787_s4 + $0x78] sm:$0xff] (!%p1087_p13)  ;;  %v1248_v17 = vpack.c.bf16 (!%p1087_p13), %v773_v13, %v772_v12 }
 0x146   : > { %1265 = vmatprep.subr.bf16.mxu1 (!%p1087_p13), %v1434_v27  ;;  %1244 = vmatprep.subr.bf16.mxu0 (!%p1087_p13), %v1434_v27  ;;  %v853_v18 = vrot.slane (!%p1087_p13), %v846_v10, %v1630_v53 }
 0x147   : > { %v706_v22 = vsel %vm705_vm4, %v702_v21, %v696_v20 }
 0x148   : > { %v708_v23 = vmax.f32 %v688_v19, %v706_v22  ;;  %v1272_v19 = vpack.c.bf16 (!%p1087_p13), %v757_v15, %v756_v14  ;;  %v860_v21 = vrot.slane (!%p1087_p13), %v853_v18, %v1630_v53 }
 0x149   : > { %1267 = vmatpush3.bf16.msra.mxu1 (!%p1087_p13), %v1266_v1  ;;  %1246 = vmatpush3.bf16.msra.mxu0 (!%p1087_p13), %v1245_v8 }
 0x14a   : > { %709 = vst [vmem:[#allocation2] sm:$0x3] %v708_v23  ;;  %1268 = vmatprep.subr.bf16.mxu1 (!%p1087_p13), %v1434_v27  ;;  %1247 = vmatprep.subr.bf16.mxu0 (!%p1087_p13), %v1434_v27 }
 0x14d   : > { %1270 = vmatpush3.bf16.msra.mxu1 %v1269_v11  ;;  %1249 = vmatpush3.bf16.msra.mxu0 %v1248_v17 }
 0x14e   : > { %1271 = vmatprep.subr.bf16.mxu1 %v1434_v27 }
 0x151   : > { %v728_v63 = vld [vmem:[#allocation2] sm:$0x3]  ;;  %1273 = vmatpush3.bf16.msra.mxu1 %v1272_v19 }
 0x152   : > { %v730_v7 = vmax.f32 %v728_v63, %v729_v0 }
 0x154   : > { %v738_v16 = vadd.f32 %v1088_v9, %v730_v7  ;;  %1224 = vmatmul.mubr.f32.vlgmr.msra.gmra.mrb[0].mxu1 %v860_v21 }
 0x156   : > { %v739_v20 = vmax.f32 %v738_v16, 0.0 }
 0x158   : > { %1189 = vmatmul.mubr.f32.vlgmr.msra.gmra.mrb[0].mxu0 %v739_v20 }
 0x227   : > { %v928_v23 = vpop.f32.mrb[0].mxu1 }
 0x228   : > { %v1225_v28 = vpop.f32.mrb[1].mxu1 }
 0x22b   : > { %v840_v22 = vpop.f32.mrb[0].mxu0 }
 0x22c   : > { %v1190_v25 = vpop.f32.mrb[1].mxu0  ;;  %v929_v26 = vadd.f32 %v928_v23, %v840_v22 }
 0x22e   : > { %v939_v29 = vadd.f32 %v1089_v24, %v929_v26 }
 0x230   : > { %v947_v27 = vrot.slane %v939_v29, %v1630_v53 }
 0x232   : > { %v948_v30 = vcombine.high %v947_v27, %v947_v27  ;;  %v955_v31 = vrot.slane %v947_v27, %v1630_v53 }
 0x234   : > { %v962_v32 = vrot.slane %v948_v30, %v1630_v53  ;;  %966 = vst.msk [vmem:[%s1551_s19] sm:$0x1] %vm965_vm6, %v955_v31 }
 0x236   : > { %967 = vst.msk [vmem:[%s1551_s19 + $0x1] sm:$0x1] %vm965_vm6, %v962_v32 }
 0x237 PF: > { %s17_s30 = sadd.s32 1, %s1426_s30   ;;  %s1791_s24 = smov %s1406_s25 }
 0x238   : > { %p14_p0 = scmp.ge.s32.totalorder %s17_s30, 6   ;;  %s1792_s25 = smov %s1528_s14 }
 0x239   : > { %s1793_s26 = smov %s1418_s28  ;;  %s1794_s27 = smov %s1422_s29 }
 0x23a   : > { %s1795_s28 = smov %s1798_s8  ;;  %s1796_s29 = smov %s1802_s9 }
 0x23b   :  { %16 = sbr.rel (!%p14_p0) target bundleno = 4 (0x4), region = 139 }

</bundles_post_ra>
